<compile_context>
chip_gen: v7x
topology: tpu7x:2x2x1
jax: 0.10.0
libtpu: 0.0.40
codegen_flags: <defaults>
</compile_context>

<pallas_src>
import functools

import jax
import jax.numpy as jnp
import numpy as np
from jax import lax
from jax.experimental import pallas as pl
from jax.experimental.pallas import tpu as pltpu


def _round_up(v, m):
    return -(-v // m) * m


def _vmem_limit_bytes():
    """Generation-aware VMEM budget (~3/4 of physical, capped at 100 MiB)."""
    try:
        cap = int(pltpu.get_tpu_info().vmem_capacity_bytes)
    except Exception:
        cap = 64 * 1024 * 1024
    return int(min(cap * 3 // 4, 100 * 1024 * 1024))


def _pick_t_tile(T, requested, Cin, H, Cout, rf, vmem_limit):
    """Largest lane-dense (multiple-of-128) time tile that fits the budget."""
    t128 = _round_up(T, 128)
    req = max(128, (int(requested) // 128) * 128)
    tt = min(req, t128)

    def est(t):  # rough resident-VMEM bytes of the heaviest stage
        bf, f4 = 2, 4
        s1 = 2 * Cin * t * bf + 2 * H * t * bf + H * Cin * bf + 3 * H * t * f4
        s2 = (2 * H * t * bf + 4 * 128 * H * bf + 2 * Cout * t * bf
              + Cout * H * bf + H * (t + rf) * f4 + 3 * H * t * f4)
        s3 = 2 * Cout * t * bf + 2 * Cin * t * f4 + 4 * Cout * t * f4
        return max(s1, s2, s3)

    while tt > 128 and est(tt) > vmem_limit // 2:
        tt -= 128
    return tt


def _lane_partial_stats(v, t_tile):
    """Per-lane partial (sum, sum-of-squares) of v: [H, Tt] -> [2, 128].

    Only the sublane (H) axis and the Tt/128 lane blocks are reduced in-kernel;
    the 128-lane + cross-tile sums finish in plain JAX (no in-kernel cross-lane
    XLU reduce, no scalar broadcast).
    """
    s = jnp.sum(v, axis=0, keepdims=True)         # [1, Tt]
    q = jnp.sum(v * v, axis=0, keepdims=True)     # [1, Tt]
    ps, qs = s[:, 0:128], q[:, 0:128]
    for k in range(1, t_tile // 128):
        ps = ps + s[:, k * 128:(k + 1) * 128]
        qs = qs + q[:, k * 128:(k + 1) * 128]
    return jnp.concatenate([ps, qs], axis=0)      # [2, 128]


# --------------------------- stage 1 ----------------------------------------
def _stage1_kernel(a1_ref, x_ref, w1_ref, b1_ref, y_ref, st_ref, *,
                   t_tile, t_real, t_padded):
    # y = PReLU1(W1 @ x + b1); bf16 operands on the MXU, f32 accumulation.
    # (NOTE: for very small channel counts the 1x1 could be a VPU FMA instead
    #  of jnp.dot; kept on the MXU since Tt keeps the N dim large.)
    x = x_ref[0]                                                    # bf16 [Cin,Tt]
    y = jnp.dot(w1_ref[...], x, preferred_element_type=jnp.float32)
    y = y + b1_ref[...]
    a1 = a1_ref[0]
    y = jnp.where(y > 0, y, a1 * y)
    if t_padded != t_real:           # mask padded tail columns out of the stats
        col = lax.broadcasted_iota(jnp.int32, y.shape, 1)
        ys = jnp.where(col < t_real - pl.program_id(1) * t_tile, y, 0.0)
    else:
        ys = y
    st_ref[0, 0] = _lane_partial_stats(ys, t_tile)
    y_ref[0] = y.astype(y_ref.dtype)


# --------------------------- stage 2 ----------------------------------------
def _stage2_kernel(*refs, kernel_size, dilation, hal_l, hal_r, use_l, use_r,
                   t_tile, halo_blk, t_real, t_padded):
    it = iter(refs)
    yl_ref = next(it) if use_l else None
    yc_ref = next(it)
    yr_ref = next(it) if use_r else None
    cp_ref = next(it)       # [1, H, 3+K]: pad_fill | bd_eff | a2 | wd_eff[0..K)
    w2_ref = next(it)       # [Cout, H] bf16  (= w3 * g2, batch independent)
    u_ref = next(it)
    st_ref = next(it)

    t = pl.program_id(1)
    f32 = jnp.float32
    H = yc_ref.shape[1]
    pad_fill = cp_ref[0, :, 0:1]          # value whose GN1 output is exactly 0
    bd_eff = cp_ref[0, :, 1:2]
    a2 = cp_ref[0, :, 2:3]

    center = yc_ref[0].astype(f32)                                   # [H, Tt]
    ragged = t_padded != t_real
    if ragged:   # columns >= T act as zero-padding of the *normalized* input
        col = lax.broadcasted_iota(jnp.int32, center.shape, 1)
        center = jnp.where(col < t_real - t * t_tile, center, pad_fill)

    # Halo buffer [H, hal_l + Tt + hal_r] built once per tile from raw bf16 y
    # (GN1 is folded into the tap weights, so no per-element FMA pass here).
    parts = []
    if hal_l > 0:
        if use_l:
            left = yl_ref[0, :, halo_blk - hal_l:].astype(f32)
            left = jnp.where(t > 0, left, pad_fill)
        else:
            left = jnp.broadcast_to(pad_fill, (H, hal_l))
        parts.append(left)
    parts.append(center)
    if hal_r > 0:
        if use_r:
            right = yr_ref[0, :, :hal_r].astype(f32)
            gcol = lax.broadcasted_iota(jnp.int32, right.shape, 1) + (t + 1) * t_tile
            right = jnp.where(gcol < t_real, right, pad_fill)
        else:
            right = jnp.broadcast_to(pad_fill, (H, hal_r))
        parts.append(right)
    halo = parts[0] if len(parts) == 1 else jnp.concatenate(parts, axis=1)

    # Depthwise conv (GN1 affine folded in): K shifted FMAs.
    z = bd_eff + cp_ref[0, :, 3:4] * halo[:, 0:t_tile]
    for k in range(1, kernel_size):
        off = k * dilation
        z = z + cp_ref[0, :, 3 + k:4 + k] * halo[:, off:off + t_tile]

    z = jnp.where(z > 0, z, a2 * z)                                  # PReLU2

    if ragged:
        col = lax.broadcasted_iota(jnp.int32, z.shape, 1)
        zs = jnp.where(col < t_real - t * t_tile, z, 0.0)
    else:
        zs = z
    st_ref[0, 0] = _lane_partial_stats(zs, t_tile)

    # Batch-invariant part of GN2 + sconv fused here: u = (w3 .* g2) @ z, so the
    # [H, T] z slab never round-trips HBM (only the smaller [Cout, T] u does).
    u = jnp.dot(w2_ref[...], z.astype(jnp.bfloat16),
                preferred_element_type=jnp.float32)
    u_ref[0] = u.astype(u_ref.dtype)


# --------------------------- stage 3 (epilogue) -------------------------------
def _stage3_kernel(*refs, use_skip):
    if use_skip:
        x_ref, u_ref, p_ref, o_ref = refs
    else:
        u_ref, p_ref, o_ref = refs
    scale = p_ref[0, :, 0:1]      # istd2 (per-sample scalar, broadcast per chan)
    bias = p_ref[0, :, 1:2]       # b3 + w3@beta2 - istd2*mu2*(w3*g2)@1
    out = u_ref[0].astype(jnp.float32) * scale + bias
    if use_skip:
        out = out + x_ref[0]
    o_ref[0] = out


# --------------------------- wrapper -----------------------------------------
def tcn_block(x, params, *, kernel_size=3, dilation=1, causal=False,
              use_skip_connection=True, eps=1e-8, t_tile=2048):
    """x: [B, Cin, T] float32 -> [B, Cout, T] float32."""
    B, Cin, T = x.shape
    H = params["w1"].shape[0]
    Cout = params["w3"].shape[0]
    K = kernel_size
    if use_skip_connection and Cout != Cin:
        raise ValueError("skip connection requires out_channels == in_channels")

    padding = dilation * (K - 1) if causal else dilation * (K - 1) // 2
    hal_l = padding                                   # left halo width
    hal_r = dilation * (K - 1) - padding              # right halo (0 if causal)
    rf = hal_l + hal_r

    vmem_limit = _vmem_limit_bytes()
    Tt = _pick_t_tile(T, t_tile, Cin, H, Cout, rf, vmem_limit)
    T_pad = _round_up(T, Tt)                          # never a giant single slab
    nT = T_pad // Tt

    halo_blk = 128 * max(1, -(-max(hal_l, hal_r, 1) // 128))
    if nT > 1 and (halo_blk > Tt or Tt % halo_blk != 0):
        halo_blk = Tt
    if max(hal_l, hal_r) > halo_blk:
        raise ValueError("depthwise receptive field larger than one T tile")
    use_l = hal_l > 0 and nT > 1
    use_r = hal_r > 0 and nT > 1
    tb = Tt // halo_blk
    last_hb = (T_pad // halo_blk - 1) if nT > 1 else 0

    f32 = jnp.float32
    x = x.astype(f32)
    xp = x if T_pad == T else jnp.pad(x, ((0, 0), (0, 0), (0, T_pad - T)))
    x_bf = xp.astype(jnp.bfloat16)   # bf16 stream for stage 1 (skip stays f32)

    a1 = params["a1"].reshape(1).astype(f32)
    w1 = params["w1"].astype(jnp.bfloat16)            # [H, Cin]
    b1 = params["b1"].reshape(H, 1).astype(f32)

    cparams = pltpu.CompilerParams(
        dimension_semantics=("parallel", "parallel"),
        vmem_limit_bytes=vmem_limit)

    # ---- stage 1: conv1x1 + PReLU1 + GN1 per-lane partial stats ----
    y, st1 = pl.pallas_call(
        functools.partial(_stage1_kernel, t_tile=Tt, t_real=T, t_padded=T_pad),
        out_shape=(jax.ShapeDtypeStruct((B, H, T_pad), jnp.bfloat16),
                   jax.ShapeDtypeStruct((B, nT, 2, 128), f32)),
        grid=(B, nT),
        in_specs=[
            pl.BlockSpec(memory_space=pltpu.MemorySpace.SMEM),      # a1 scalar
            pl.BlockSpec((1, Cin, Tt), lambda b, t: (b, 0, t)),     # x (bf16)
            pl.BlockSpec((H, Cin), lambda b, t: (0, 0)),            # w1 (bf16)
            pl.BlockSpec((H, 1), lambda b, t: (0, 0)),              # b1
        ],
        out_specs=(
            pl.BlockSpec((1, H, Tt), lambda b, t: (b, 0, t)),
            pl.BlockSpec((1, 1, 2, 128), lambda b, t: (b, t, 0, 0)),
        ),
        compiler_params=cparams,
    )(a1, x_bf, w1, b1)

    # ---- GroupNorm-1 stats (tiny cross-tile/lane reduction in plain JAX) ----
    # TODO(synk): E[x^2]-E[x]^2 in f32 can cancel for |mean| >> std; a Welford
    # merge of per-tile centered partials would be more robust if needed.
    n_elem = float(H * T)
    s1 = st1.sum(axis=(1, 3))                          # [B, 2]
    mu1 = s1[:, 0] / n_elem
    var1 = jnp.maximum(s1[:, 1] / n_elem - mu1 * mu1, 0.0)
    istd1 = lax.rsqrt(var1 + eps)

    g1 = params["g1"].astype(f32)
    be1 = params["beta1"].astype(f32)
    A1 = g1[None, :] * istd1[:, None]                                # [B, H]
    B1 = be1[None, :] - g1[None, :] * (mu1 * istd1)[:, None]         # [B, H]
    wd = params["wd"].astype(f32)                                    # [H, K]
    bd = params["bd"].astype(f32)
    a2 = params["a2"].reshape(()).astype(f32)
    # Fold GN1 into the depthwise conv; out-of-sequence positions are filled
    # with pad_fill so the *normalized* signal is exactly zero-padded there.
    A1_safe = jnp.where(jnp.abs(A1) < 1e-12, 1e-12, A1)   # guard (g1 ~ 0 only)
    pad_fill = -B1 / A1_safe
    wd_eff = wd[None, :, :] * A1[:, :, None]                         # [B, H, K]
    bd_eff = bd[None, :] + B1 * wd.sum(axis=1)[None, :]              # [B, H]
    cpar2 = jnp.concatenate(
        [pad_fill[:, :, None], bd_eff[:, :, None],
         jnp.broadcast_to(a2, (B, H))[:, :, None], wd_eff], axis=2)  # [B,H,3+K]

    g2 = params["g2"].astype(f32)
    w3 = params["w3"].astype(f32)                                    # [Cout, H]
    w2 = (w3 * g2[None, :]).astype(jnp.bfloat16)                     # [Cout, H]

    # ---- stage 2: folded GN1 + depthwise + PReLU2 + GN2 stats + (w3*g2)@z ----
    s2_in_specs = []
    s2_args = []
    if use_l:
        s2_in_specs.append(pl.BlockSpec(
            (1, H, halo_blk), lambda b, t: (b, 0, jnp.maximum(t * tb - 1, 0))))
        s2_args.append(y)
    s2_in_specs.append(pl.BlockSpec((1, H, Tt), lambda b, t: (b, 0, t)))
    s2_args.append(y)
    if use_r:
        s2_in_specs.append(pl.BlockSpec(
            (1, H, halo_blk),
            lambda b, t: (b, 0, jnp.minimum((t + 1) * tb, last_hb))))
        s2_args.append(y)
    s2_in_specs.append(pl.BlockSpec((1, H, 3 + K), lambda b, t: (b, 0, 0)))
    s2_args.append(cpar2)
    s2_in_specs.append(pl.BlockSpec((Cout, H), lambda b, t: (0, 0)))
    s2_args.append(w2)

    u, st2 = pl.pallas_call(
        functools.partial(_stage2_kernel, kernel_size=K, dilation=dilation,
                          hal_l=hal_l, hal_r=hal_r, use_l=use_l, use_r=use_r,
                          t_tile=Tt, halo_blk=halo_blk, t_real=T, t_padded=T_pad),
        out_shape=(jax.ShapeDtypeStruct((B, Cout, T_pad), jnp.bfloat16),
                   jax.ShapeDtypeStruct((B, nT, 2, 128), f32)),
        grid=(B, nT),
        in_specs=s2_in_specs,
        out_specs=(
            pl.BlockSpec((1, Cout, Tt), lambda b, t: (b, 0, t)),
            pl.BlockSpec((1, 1, 2, 128), lambda b, t: (b, t, 0, 0)),
        ),
        compiler_params=cparams,
    )(*s2_args)

    # ---- GroupNorm-2 stats; istd2/mu2 are per-sample scalars -> epilogue ----
    s2s = st2.sum(axis=(1, 3))
    mu2 = s2s[:, 0] / n_elem
    var2 = jnp.maximum(s2s[:, 1] / n_elem - mu2 * mu2, 0.0)
    istd2 = lax.rsqrt(var2 + eps)

    be2 = params["beta2"].astype(f32)
    b3 = params["b3"].astype(f32)
    csum = w2.astype(f32).sum(axis=1)                                # (w3*g2)@1
    beff = (b3 + w3 @ be2)[None, :] - (istd2 * mu2)[:, None] * csum[None, :]
    cpar3 = jnp.stack(
        [jnp.broadcast_to(istd2[:, None], (B, Cout)), beff], axis=2)  # [B,Cout,2]

    # ---- stage 3: out = istd2*u + beff (+ skip)  -- pure VPU epilogue ----
    s3_in_specs = []
    s3_args = []
    if use_skip_connection:
        s3_in_specs.append(pl.BlockSpec((1, Cin, Tt), lambda b, t: (b, 0, t)))
        s3_args.append(xp)
    s3_in_specs += [
        pl.BlockSpec((1, Cout, Tt), lambda b, t: (b, 0, t)),          # u (bf16)
        pl.BlockSpec((1, Cout, 2), lambda b, t: (b, 0, 0)),           # scale|bias
    ]
    s3_args += [u, cpar3]

    out = pl.pallas_call(
        functools.partial(_stage3_kernel, use_skip=use_skip_connection),
        out_shape=jax.ShapeDtypeStruct((B, Cout, T_pad), f32),
        grid=(B, nT),
        in_specs=s3_in_specs,
        out_specs=pl.BlockSpec((1, Cout, Tt), lambda b, t: (b, 0, t)),
        compiler_params=cparams,
    )(*s3_args)

    if T_pad != T:
        out = out[:, :, :T]
    return out


# --------------------------- pure-JAX reference -------------------------------
def tcn_ref(x, p, *, kernel_size=3, dilation=1, causal=False,
            use_skip_connection=True, eps=1e-8):
    """Pure-JAX f32 reference mirroring the PyTorch forward."""
    padding = dilation * (kernel_size - 1) if causal \
        else dilation * (kernel_size - 1) // 2

    def one(xb):
        T = xb.shape[-1]
        y = p["w1"] @ xb + p["b1"][:, None]
        y = jnp.where(y > 0, y, p["a1"][0] * y)
        mu = y.mean(); var = ((y - mu) ** 2).mean()
        y = (y - mu) / jnp.sqrt(var + eps) * p["g1"][:, None] + p["beta1"][:, None]
        ypad = jnp.pad(y, ((0, 0), (padding, padding)))
        z = p["bd"][:, None]
        for k in range(kernel_size):
            z = z + p["wd"][:, k:k + 1] * ypad[:, k * dilation:k * dilation + T]
        z = jnp.where(z > 0, z, p["a2"][0] * z)
        mu2 = z.mean(); var2 = ((z - mu2) ** 2).mean()
        z = (z - mu2) / jnp.sqrt(var2 + eps) * p["g2"][:, None] + p["beta2"][:, None]
        out = p["w3"] @ z + p["b3"][:, None]
        return out + xb if use_skip_connection else out

    return jax.vmap(one)(x)


if __name__ == "__main__":
    # Small TPU-friendly shapes consistent with the module (Cin == Cout so the
    # residual skip is valid).  Cases cover: single-tile, multi-tile halos,
    # causal + dilated, and a ragged T (pad/mask path).
    B, Cin, H, Cout, K = 2, 8, 16, 8, 3

    key = jax.random.PRNGKey(0)
    ks = jax.random.split(key, 12)
    params = {
        "w1":    0.1 * jax.random.normal(ks[0], (H, Cin), jnp.float32),
        "b1":    0.1 * jax.random.normal(ks[1], (H,), jnp.float32),
        "a1":    jnp.array([0.25], jnp.float32),
        "g1":    1.0 + 0.1 * jax.random.normal(ks[2], (H,), jnp.float32),
        "beta1": 0.1 * jax.random.normal(ks[3], (H,), jnp.float32),
        "wd":    0.1 * jax.random.normal(ks[4], (H, K), jnp.float32),
        "bd":    0.1 * jax.random.normal(ks[5], (H,), jnp.float32),
        "a2":    jnp.array([0.25], jnp.float32),
        "g2":    1.0 + 0.1 * jax.random.normal(ks[6], (H,), jnp.float32),
        "beta2": 0.1 * jax.random.normal(ks[7], (H,), jnp.float32),
        "w3":    0.1 * jax.random.normal(ks[8], (Cout, H), jnp.float32),
        "b3":    0.1 * jax.random.normal(ks[9], (Cout,), jnp.float32),
    }

    cases = [
        dict(T=256, dilation=1, causal=False, skip=True, t_tile=2048),  # 1 tile
        dict(T=256, dilation=1, causal=False, skip=True, t_tile=128),   # halos
        dict(T=256, dilation=2, causal=True, skip=False, t_tile=128),   # causal
        dict(T=320, dilation=1, causal=False, skip=True, t_tile=128),   # ragged
    ]
    for c in cases:
        x = jax.random.normal(ks[10], (B, Cin, c["T"]), jnp.float32)
        fn = jax.jit(functools.partial(
            tcn_block, kernel_size=K, dilation=c["dilation"], causal=c["causal"],
            use_skip_connection=c["skip"], t_tile=c["t_tile"]))
        out = jax.block_until_ready(fn(x, params))
        ref = tcn_ref(x, params, kernel_size=K, dilation=c["dilation"],
                      causal=c["causal"], use_skip_connection=c["skip"])
        np.testing.assert_allclose(np.asarray(out), np.asarray(ref),
                                   rtol=2e-2, atol=2e-2)

    print("KERNEL_OK")
</pallas_src>

<mosaic_0001>
module attributes {stable_mosaic.version = 11 : i64} {
  func.func @_stage1_kernel(%arg0: i32, %arg1: i32, %arg2: memref<1xf32, #tpu.memory_space<smem>>, %arg3: memref<1x8x256xbf16, #tpu.memory_space<vmem>>, %arg4: memref<16x8xbf16, #tpu.memory_space<vmem>>, %arg5: memref<16x1xf32, #tpu.memory_space<vmem>>, %arg6: memref<1x16x256xbf16, #tpu.memory_space<vmem>>, %arg7: memref<1x1x2x128xf32, #tpu.memory_space<vmem>>) attributes {dimension_semantics = [#tpu.dimension_semantics<parallel>, #tpu.dimension_semantics<parallel>], iteration_bounds = array<i64: 2, 1>, scalar_prefetch = 0 : i64, scratch_operands = 0 : i64, tpu.core_type = #tpu.core_type<tc>, window_params = [{transform_indices = @transform_0, window_bounds = array<i64: 1>}, {transform_indices = @transform_1, window_bounds = array<i64: 1, 8, 256>}, {pipeline_mode = #tpu.pipeline_mode<synchronous>, transform_indices = @transform_2, window_bounds = array<i64: 16, 8>}, {pipeline_mode = #tpu.pipeline_mode<synchronous>, transform_indices = @transform_3, window_bounds = array<i64: 16, 1>}, {transform_indices = @transform_4, window_bounds = array<i64: 1, 16, 256>}, {transform_indices = @transform_5, window_bounds = array<i64: 1, 1, 2, 128>}]} {
    %c0 = arith.constant 0 : index
    %c0_0 = arith.constant 0 : index
    %c0_1 = arith.constant 0 : index
    %0 = vector.load %arg3[%c0, %c0_0, %c0_1] : memref<1x8x256xbf16, #tpu.memory_space<vmem>>, vector<1x8x256xbf16>
    %1 = vector.shape_cast %0 : vector<1x8x256xbf16> to vector<8x256xbf16>
    %c0_2 = arith.constant 0 : index
    %c0_3 = arith.constant 0 : index
    %2 = vector.load %arg4[%c0_2, %c0_3] : memref<16x8xbf16, #tpu.memory_space<vmem>>, vector<16x8xbf16>
    %cst = arith.constant dense<0.000000e+00> : vector<16x256xf32>
    %3 = tpu.matmul %2, %1, %cst {dimension_numbers = #tpu.dot_dimension_numbers<[1], [0], [0], [1], [0, 0, 1, 1], [], []>} : vector<16x8xbf16>, vector<8x256xbf16>, vector<16x256xf32> -> vector<16x256xf32>
    %c0_4 = arith.constant 0 : index
    %c0_5 = arith.constant 0 : index
    %4 = vector.load %arg5[%c0_4, %c0_5] : memref<16x1xf32, #tpu.memory_space<vmem>>, vector<16x1xf32>
    %5 = vector.broadcast %4 : vector<16x1xf32> to vector<16x256xf32>
    %6 = arith.addf %3, %5 : vector<16x256xf32>
    %c0_6 = arith.constant 0 : index
    %7 = memref.load %arg2[%c0_6] : memref<1xf32, #tpu.memory_space<smem>>
    %cst_7 = arith.constant 0.000000e+00 : f32
    %8 = vector.broadcast %cst_7 : f32 to vector<16x256xf32>
    %9 = arith.cmpf ogt, %6, %8 : vector<16x256xf32>
    %10 = vector.broadcast %7 : f32 to vector<16x256xf32>
    %11 = arith.mulf %10, %6 : vector<16x256xf32>
    %12 = arith.select %9, %6, %11 : vector<16x256xi1>, vector<16x256xf32>
    %cst_8 = arith.constant dense<0.000000e+00> : vector<256xf32>
    %13 = vector.multi_reduction <add>, %12, %cst_8 [0] : vector<16x256xf32> to vector<256xf32>
    %14 = vector.shape_cast %13 : vector<256xf32> to vector<1x256xf32>
    %15 = arith.mulf %12, %12 : vector<16x256xf32>
    %cst_9 = arith.constant dense<0.000000e+00> : vector<256xf32>
    %16 = vector.multi_reduction <add>, %15, %cst_9 [0] : vector<16x256xf32> to vector<256xf32>
    %17 = vector.shape_cast %16 : vector<256xf32> to vector<1x256xf32>
    %18 = vector.extract_strided_slice %14 {offsets = [0, 0], sizes = [1, 128], strides = [1, 1]} : vector<1x256xf32> to vector<1x128xf32>
    %19 = vector.extract_strided_slice %17 {offsets = [0, 0], sizes = [1, 128], strides = [1, 1]} : vector<1x256xf32> to vector<1x128xf32>
    %20 = vector.extract_strided_slice %14 {offsets = [0, 128], sizes = [1, 128], strides = [1, 1]} : vector<1x256xf32> to vector<1x128xf32>
    %21 = arith.addf %18, %20 : vector<1x128xf32>
    %22 = vector.extract_strided_slice %17 {offsets = [0, 128], sizes = [1, 128], strides = [1, 1]} : vector<1x256xf32> to vector<1x128xf32>
    %23 = arith.addf %19, %22 : vector<1x128xf32>
    %24 = tpu.concatenate %21, %23 in 0 : vector<1x128xf32>, vector<1x128xf32> -> vector<2x128xf32>
    %c0_10 = arith.constant 0 : index
    %c0_11 = arith.constant 0 : index
    %c0_12 = arith.constant 0 : index
    %c0_13 = arith.constant 0 : index
    %25 = vector.load %arg7[%c0_10, %c0_11, %c0_12, %c0_13] : memref<1x1x2x128xf32, #tpu.memory_space<vmem>>, vector<1x1x2x128xf32>
    %26 = vector.shape_cast %25 : vector<1x1x2x128xf32> to vector<2x128xf32>
    %27 = vector.shape_cast %24 : vector<2x128xf32> to vector<1x1x2x128xf32>
    tpu.vector_store %arg7[%c0_10, %c0_11, %c0_12, %c0_13], %27 {strides = array<i32>} : memref<1x1x2x128xf32, #tpu.memory_space<vmem>>, vector<1x1x2x128xf32>,
    %28 = arith.truncf %12 : vector<16x256xf32> to vector<16x256xbf16>
    %c0_14 = arith.constant 0 : index
    %c0_15 = arith.constant 0 : index
    %c0_16 = arith.constant 0 : index
    %29 = vector.load %arg6[%c0_14, %c0_15, %c0_16] : memref<1x16x256xbf16, #tpu.memory_space<vmem>>, vector<1x16x256xbf16>
    %30 = vector.shape_cast %29 : vector<1x16x256xbf16> to vector<16x256xbf16>
    %31 = vector.shape_cast %28 : vector<16x256xbf16> to vector<1x16x256xbf16>
    tpu.vector_store %arg6[%c0_14, %c0_15, %c0_16], %31 {strides = array<i32>} : memref<1x16x256xbf16, #tpu.memory_space<vmem>>, vector<1x16x256xbf16>,
    return
  }
  func.func @transform_0(%arg0: i32, %arg1: i32) -> i32 {
    %c0_i32 = arith.constant 0 : i32
    %c0_i32_0 = arith.constant 0 : i32
    return %c0_i32 : i32
  }
  func.func @transform_1(%arg0: i32, %arg1: i32) -> (i32, i32, i32) {
    %c0_i32 = arith.constant 0 : i32
    %c0_i32_0 = arith.constant 0 : i32
    return %arg0, %c0_i32, %arg1 : i32, i32, i32
  }
  func.func @transform_2(%arg0: i32, %arg1: i32) -> (i32, i32) {
    %c0_i32 = arith.constant 0 : i32
    %c0_i32_0 = arith.constant 0 : i32
    %c0_i32_1 = arith.constant 0 : i32
    return %c0_i32, %c0_i32_0 : i32, i32
  }
  func.func @transform_3(%arg0: i32, %arg1: i32) -> (i32, i32) {
    %c0_i32 = arith.constant 0 : i32
    %c0_i32_0 = arith.constant 0 : i32
    %c0_i32_1 = arith.constant 0 : i32
    return %c0_i32, %c0_i32_0 : i32, i32
  }
  func.func @transform_4(%arg0: i32, %arg1: i32) -> (i32, i32, i32) {
    %c0_i32 = arith.constant 0 : i32
    %c0_i32_0 = arith.constant 0 : i32
    return %arg0, %c0_i32, %arg1 : i32, i32, i32
  }
  func.func @transform_5(%arg0: i32, %arg1: i32) -> (i32, i32, i32, i32) {
    %c0_i32 = arith.constant 0 : i32
    %c0_i32_0 = arith.constant 0 : i32
    %c0_i32_1 = arith.constant 0 : i32
    return %arg0, %arg1, %c0_i32, %c0_i32_0 : i32, i32, i32, i32
  }
}

module attributes {stable_mosaic.version = 11 : i64} {
  func.func @_stage2_kernel(%arg0: i32, %arg1: i32, %arg2: memref<1x16x256xbf16, #tpu.memory_space<vmem>>, %arg3: memref<1x16x6xf32, #tpu.memory_space<vmem>>, %arg4: memref<8x16xbf16, #tpu.memory_space<vmem>>, %arg5: memref<1x8x256xbf16, #tpu.memory_space<vmem>>, %arg6: memref<1x1x2x128xf32, #tpu.memory_space<vmem>>) attributes {dimension_semantics = [#tpu.dimension_semantics<parallel>, #tpu.dimension_semantics<parallel>], iteration_bounds = array<i64: 2, 1>, scalar_prefetch = 0 : i64, scratch_operands = 0 : i64, tpu.core_type = #tpu.core_type<tc>, window_params = [{transform_indices = @transform_0, window_bounds = array<i64: 1, 16, 256>}, {transform_indices = @transform_1, window_bounds = array<i64: 1, 16, 6>}, {pipeline_mode = #tpu.pipeline_mode<synchronous>, transform_indices = @transform_2, window_bounds = array<i64: 8, 16>}, {transform_indices = @transform_3, window_bounds = array<i64: 1, 8, 256>}, {transform_indices = @transform_4, window_bounds = array<i64: 1, 1, 2, 128>}]} {
    %c0 = arith.constant 0 : index
    %c0_0 = arith.constant 0 : index
    %c0_1 = arith.constant 0 : index
    %0 = vector.load %arg3[%c0, %c0_0, %c0_1] : memref<1x16x6xf32, #tpu.memory_space<vmem>>, vector<1x16x1xf32>
    %1 = vector.shape_cast %0 : vector<1x16x1xf32> to vector<16x1xf32>
    %c0_2 = arith.constant 0 : index
    %c0_3 = arith.constant 0 : index
    %c1 = arith.constant 1 : index
    %2 = vector.load %arg3[%c0_2, %c0_3, %c1] : memref<1x16x6xf32, #tpu.memory_space<vmem>>, vector<1x16x1xf32>
    %3 = vector.shape_cast %2 : vector<1x16x1xf32> to vector<16x1xf32>
    %c0_4 = arith.constant 0 : index
    %c0_5 = arith.constant 0 : index
    %c2 = arith.constant 2 : index
    %4 = vector.load %arg3[%c0_4, %c0_5, %c2] : memref<1x16x6xf32, #tpu.memory_space<vmem>>, vector<1x16x1xf32>
    %5 = vector.shape_cast %4 : vector<1x16x1xf32> to vector<16x1xf32>
    %c0_6 = arith.constant 0 : index
    %c0_7 = arith.constant 0 : index
    %c0_8 = arith.constant 0 : index
    %6 = vector.load %arg2[%c0_6, %c0_7, %c0_8] : memref<1x16x256xbf16, #tpu.memory_space<vmem>>, vector<1x16x256xbf16>
    %7 = vector.shape_cast %6 : vector<1x16x256xbf16> to vector<16x256xbf16>
    %8 = arith.extf %7 : vector<16x256xbf16> to vector<16x256xf32>
    %9 = tpu.concatenate %1, %8, %1 in 1 : vector<16x1xf32>, vector<16x256xf32>, vector<16x1xf32> -> vector<16x258xf32>
    %c0_9 = arith.constant 0 : index
    %c0_10 = arith.constant 0 : index
    %c3 = arith.constant 3 : index
    %10 = vector.load %arg3[%c0_9, %c0_10, %c3] : memref<1x16x6xf32, #tpu.memory_space<vmem>>, vector<1x16x1xf32>
    %11 = vector.shape_cast %10 : vector<1x16x1xf32> to vector<16x1xf32>
    %12 = vector.extract_strided_slice %9 {offsets = [0, 0], sizes = [16, 256], strides = [1, 1]} : vector<16x258xf32> to vector<16x256xf32>
    %13 = vector.broadcast %11 : vector<16x1xf32> to vector<16x256xf32>
    %14 = arith.mulf %13, %12 : vector<16x256xf32>
    %15 = vector.broadcast %3 : vector<16x1xf32> to vector<16x256xf32>
    %16 = arith.addf %15, %14 : vector<16x256xf32>
    %c0_11 = arith.constant 0 : index
    %c0_12 = arith.constant 0 : index
    %c4 = arith.constant 4 : index
    %17 = vector.load %arg3[%c0_11, %c0_12, %c4] : memref<1x16x6xf32, #tpu.memory_space<vmem>>, vector<1x16x1xf32>
    %18 = vector.shape_cast %17 : vector<1x16x1xf32> to vector<16x1xf32>
    %19 = vector.extract_strided_slice %9 {offsets = [0, 1], sizes = [16, 256], strides = [1, 1]} : vector<16x258xf32> to vector<16x256xf32>
    %20 = vector.broadcast %18 : vector<16x1xf32> to vector<16x256xf32>
    %21 = arith.mulf %20, %19 : vector<16x256xf32>
    %22 = arith.addf %16, %21 : vector<16x256xf32>
    %c0_13 = arith.constant 0 : index
    %c0_14 = arith.constant 0 : index
    %c5 = arith.constant 5 : index
    %23 = vector.load %arg3[%c0_13, %c0_14, %c5] : memref<1x16x6xf32, #tpu.memory_space<vmem>>, vector<1x16x1xf32>
    %24 = vector.shape_cast %23 : vector<1x16x1xf32> to vector<16x1xf32>
    %25 = vector.extract_strided_slice %9 {offsets = [0, 2], sizes = [16, 256], strides = [1, 1]} : vector<16x258xf32> to vector<16x256xf32>
    %26 = vector.broadcast %24 : vector<16x1xf32> to vector<16x256xf32>
    %27 = arith.mulf %26, %25 : vector<16x256xf32>
    %28 = arith.addf %22, %27 : vector<16x256xf32>
    %cst = arith.constant 0.000000e+00 : f32
    %29 = vector.broadcast %cst : f32 to vector<16x256xf32>
    %30 = arith.cmpf ogt, %28, %29 : vector<16x256xf32>
    %31 = vector.broadcast %5 : vector<16x1xf32> to vector<16x256xf32>
    %32 = arith.mulf %31, %28 : vector<16x256xf32>
    %33 = arith.select %30, %28, %32 : vector<16x256xi1>, vector<16x256xf32>
    %cst_15 = arith.constant dense<0.000000e+00> : vector<256xf32>
    %34 = vector.multi_reduction <add>, %33, %cst_15 [0] : vector<16x256xf32> to vector<256xf32>
    %35 = vector.shape_cast %34 : vector<256xf32> to vector<1x256xf32>
    %36 = arith.mulf %33, %33 : vector<16x256xf32>
    %cst_16 = arith.constant dense<0.000000e+00> : vector<256xf32>
    %37 = vector.multi_reduction <add>, %36, %cst_16 [0] : vector<16x256xf32> to vector<256xf32>
    %38 = vector.shape_cast %37 : vector<256xf32> to vector<1x256xf32>
    %39 = vector.extract_strided_slice %35 {offsets = [0, 0], sizes = [1, 128], strides = [1, 1]} : vector<1x256xf32> to vector<1x128xf32>
    %40 = vector.extract_strided_slice %38 {offsets = [0, 0], sizes = [1, 128], strides = [1, 1]} : vector<1x256xf32> to vector<1x128xf32>
    %41 = vector.extract_strided_slice %35 {offsets = [0, 128], sizes = [1, 128], strides = [1, 1]} : vector<1x256xf32> to vector<1x128xf32>
    %42 = arith.addf %39, %41 : vector<1x128xf32>
    %43 = vector.extract_strided_slice %38 {offsets = [0, 128], sizes = [1, 128], strides = [1, 1]} : vector<1x256xf32> to vector<1x128xf32>
    %44 = arith.addf %40, %43 : vector<1x128xf32>
    %45 = tpu.concatenate %42, %44 in 0 : vector<1x128xf32>, vector<1x128xf32> -> vector<2x128xf32>
    %c0_17 = arith.constant 0 : index
    %c0_18 = arith.constant 0 : index
    %c0_19 = arith.constant 0 : index
    %c0_20 = arith.constant 0 : index
    %46 = vector.load %arg6[%c0_17, %c0_18, %c0_19, %c0_20] : memref<1x1x2x128xf32, #tpu.memory_space<vmem>>, vector<1x1x2x128xf32>
    %47 = vector.shape_cast %46 : vector<1x1x2x128xf32> to vector<2x128xf32>
    %48 = vector.shape_cast %45 : vector<2x128xf32> to vector<1x1x2x128xf32>
    tpu.vector_store %arg6[%c0_17, %c0_18, %c0_19, %c0_20], %48 {strides = array<i32>} : memref<1x1x2x128xf32, #tpu.memory_space<vmem>>, vector<1x1x2x128xf32>,
    %c0_21 = arith.constant 0 : index
    %c0_22 = arith.constant 0 : index
    %49 = vector.load %arg4[%c0_21, %c0_22] : memref<8x16xbf16, #tpu.memory_space<vmem>>, vector<8x16xbf16>
    %50 = arith.truncf %33 : vector<16x256xf32> to vector<16x256xbf16>
    %cst_23 = arith.constant dense<0.000000e+00> : vector<8x256xf32>
    %51 = tpu.matmul %49, %50, %cst_23 {dimension_numbers = #tpu.dot_dimension_numbers<[1], [0], [0], [1], [0, 0, 1, 1], [], []>} : vector<8x16xbf16>, vector<16x256xbf16>, vector<8x256xf32> -> vector<8x256xf32>
    %52 = arith.truncf %51 : vector<8x256xf32> to vector<8x256xbf16>
    %c0_24 = arith.constant 0 : index
    %c0_25 = arith.constant 0 : index
    %c0_26 = arith.constant 0 : index
    %53 = vector.load %arg5[%c0_24, %c0_25, %c0_26] : memref<1x8x256xbf16, #tpu.memory_space<vmem>>, vector<1x8x256xbf16>
    %54 = vector.shape_cast %53 : vector<1x8x256xbf16> to vector<8x256xbf16>
    %55 = vector.shape_cast %52 : vector<8x256xbf16> to vector<1x8x256xbf16>
    tpu.vector_store %arg5[%c0_24, %c0_25, %c0_26], %55 {strides = array<i32>} : memref<1x8x256xbf16, #tpu.memory_space<vmem>>, vector<1x8x256xbf16>,
    return
  }
  func.func @transform_0(%arg0: i32, %arg1: i32) -> (i32, i32, i32) {
    %c0_i32 = arith.constant 0 : i32
    %c0_i32_0 = arith.constant 0 : i32
    return %arg0, %c0_i32, %arg1 : i32, i32, i32
  }
  func.func @transform_1(%arg0: i32, %arg1: i32) -> (i32, i32, i32) {
    %c0_i32 = arith.constant 0 : i32
    %c0_i32_0 = arith.constant 0 : i32
    %c0_i32_1 = arith.constant 0 : i32
    return %arg0, %c0_i32, %c0_i32_0 : i32, i32, i32
  }
  func.func @transform_2(%arg0: i32, %arg1: i32) -> (i32, i32) {
    %c0_i32 = arith.constant 0 : i32
    %c0_i32_0 = arith.constant 0 : i32
    %c0_i32_1 = arith.constant 0 : i32
    return %c0_i32, %c0_i32_0 : i32, i32
  }
  func.func @transform_3(%arg0: i32, %arg1: i32) -> (i32, i32, i32) {
    %c0_i32 = arith.constant 0 : i32
    %c0_i32_0 = arith.constant 0 : i32
    return %arg0, %c0_i32, %arg1 : i32, i32, i32
  }
  func.func @transform_4(%arg0: i32, %arg1: i32) -> (i32, i32, i32, i32) {
    %c0_i32 = arith.constant 0 : i32
    %c0_i32_0 = arith.constant 0 : i32
    %c0_i32_1 = arith.constant 0 : i32
    return %arg0, %arg1, %c0_i32, %c0_i32_0 : i32, i32, i32, i32
  }
}

module attributes {stable_mosaic.version = 11 : i64} {
  func.func @_stage3_kernel(%arg0: i32, %arg1: i32, %arg2: memref<1x8x256xf32, #tpu.memory_space<vmem>>, %arg3: memref<1x8x256xbf16, #tpu.memory_space<vmem>>, %arg4: memref<1x8x2xf32, #tpu.memory_space<vmem>>, %arg5: memref<1x8x256xf32, #tpu.memory_space<vmem>>) attributes {dimension_semantics = [#tpu.dimension_semantics<parallel>, #tpu.dimension_semantics<parallel>], iteration_bounds = array<i64: 2, 1>, scalar_prefetch = 0 : i64, scratch_operands = 0 : i64, tpu.core_type = #tpu.core_type<tc>, window_params = [{transform_indices = @transform_0, window_bounds = array<i64: 1, 8, 256>}, {transform_indices = @transform_1, window_bounds = array<i64: 1, 8, 256>}, {transform_indices = @transform_2, window_bounds = array<i64: 1, 8, 2>}, {transform_indices = @transform_3, window_bounds = array<i64: 1, 8, 256>}]} {
    %c0 = arith.constant 0 : index
    %c0_0 = arith.constant 0 : index
    %c0_1 = arith.constant 0 : index
    %0 = vector.load %arg4[%c0, %c0_0, %c0_1] : memref<1x8x2xf32, #tpu.memory_space<vmem>>, vector<1x8x1xf32>
    %1 = vector.shape_cast %0 : vector<1x8x1xf32> to vector<8x1xf32>
    %c0_2 = arith.constant 0 : index
    %c0_3 = arith.constant 0 : index
    %c1 = arith.constant 1 : index
    %2 = vector.load %arg4[%c0_2, %c0_3, %c1] : memref<1x8x2xf32, #tpu.memory_space<vmem>>, vector<1x8x1xf32>
    %3 = vector.shape_cast %2 : vector<1x8x1xf32> to vector<8x1xf32>
    %c0_4 = arith.constant 0 : index
    %c0_5 = arith.constant 0 : index
    %c0_6 = arith.constant 0 : index
    %4 = vector.load %arg3[%c0_4, %c0_5, %c0_6] : memref<1x8x256xbf16, #tpu.memory_space<vmem>>, vector<1x8x256xbf16>
    %5 = vector.shape_cast %4 : vector<1x8x256xbf16> to vector<8x256xbf16>
    %6 = arith.extf %5 : vector<8x256xbf16> to vector<8x256xf32>
    %7 = vector.broadcast %1 : vector<8x1xf32> to vector<8x256xf32>
    %8 = arith.mulf %6, %7 : vector<8x256xf32>
    %9 = vector.broadcast %3 : vector<8x1xf32> to vector<8x256xf32>
    %10 = arith.addf %8, %9 : vector<8x256xf32>
    %c0_7 = arith.constant 0 : index
    %c0_8 = arith.constant 0 : index
    %c0_9 = arith.constant 0 : index
    %11 = vector.load %arg2[%c0_7, %c0_8, %c0_9] : memref<1x8x256xf32, #tpu.memory_space<vmem>>, vector<1x8x256xf32>
    %12 = vector.shape_cast %11 : vector<1x8x256xf32> to vector<8x256xf32>
    %13 = arith.addf %10, %12 : vector<8x256xf32>
    %c0_10 = arith.constant 0 : index
    %c0_11 = arith.constant 0 : index
    %c0_12 = arith.constant 0 : index
    %14 = vector.load %arg5[%c0_10, %c0_11, %c0_12] : memref<1x8x256xf32, #tpu.memory_space<vmem>>, vector<1x8x256xf32>
    %15 = vector.shape_cast %14 : vector<1x8x256xf32> to vector<8x256xf32>
    %16 = vector.shape_cast %13 : vector<8x256xf32> to vector<1x8x256xf32>
    tpu.vector_store %arg5[%c0_10, %c0_11, %c0_12], %16 {strides = array<i32>} : memref<1x8x256xf32, #tpu.memory_space<vmem>>, vector<1x8x256xf32>,
    return
  }
  func.func @transform_0(%arg0: i32, %arg1: i32) -> (i32, i32, i32) {
    %c0_i32 = arith.constant 0 : i32
    %c0_i32_0 = arith.constant 0 : i32
    return %arg0, %c0_i32, %arg1 : i32, i32, i32
  }
  func.func @transform_1(%arg0: i32, %arg1: i32) -> (i32, i32, i32) {
    %c0_i32 = arith.constant 0 : i32
    %c0_i32_0 = arith.constant 0 : i32
    return %arg0, %c0_i32, %arg1 : i32, i32, i32
  }
  func.func @transform_2(%arg0: i32, %arg1: i32) -> (i32, i32, i32) {
    %c0_i32 = arith.constant 0 : i32
    %c0_i32_0 = arith.constant 0 : i32
    %c0_i32_1 = arith.constant 0 : i32
    return %arg0, %c0_i32, %c0_i32_0 : i32, i32, i32
  }
  func.func @transform_3(%arg0: i32, %arg1: i32) -> (i32, i32, i32) {
    %c0_i32 = arith.constant 0 : i32
    %c0_i32_0 = arith.constant 0 : i32
    return %arg0, %c0_i32, %arg1 : i32, i32, i32
  }
}

</mosaic_0001>

<bundles_post_ra>
// kernel: tcn_block.4
= control target key start
LH: loop header
LB: loop body
LE: loop exit
PB: predicated region body
PF: predicated region fallthrough
CT: control target
= control target key end

     0   :  { %s815_s15 = smov 0   ;;  %s817_s16 = smov 0   ;;  %s876_s0 = inlined_call_operand.vmem [shape: bf16[2,16,256], index: 0, kind: input, shape index: {}]   ;;  %s877_s1 = inlined_call_operand.vmem [shape: f32[2,16,6], index: 1, kind: input, shape index: {}]   ;;  %s878_s2 = inlined_call_operand.vmem [shape: bf16[8,16], index: 2, kind: input, shape index: {}]   ;;  %s879_s3 = inlined_call_operand.vmem [shape: bf16[2,8,256], index: 3, kind: output, shape index: {0}]   ;;  %s880_s4 = inlined_call_operand.vmem [shape: f32[2,1,2,128], index: 4, kind: output, shape index: {1}]  }
   0x1   :  { %s819_s17 = smov 0  }
   0x2 LB: > { %s27_s18 = sadd.s32 1, %s775_s16  ;;  %p690_p0 = scmp.ge.s32.totalorder %s779_s17, 1  ;;  %s779_s17 = sphi %s819_s17, %s15_s17   ;;  %s775_s16 = sphi %s817_s16, %s882_s16   ;;  %s771_s15 = sphi %s815_s15, %s881_s15  }
   0x3   : > { %p29_p1 = scmp.ge.s32.totalorder %s27_s18, 2  ;;  %p198_p2 = scmp.lt.s32.totalorder %s779_s17, 3 }
   0x5   : > { %s884_s18 = smov (%p29_p1, %s27_s18), 0  ;;  %p199_p3 = pnand %p690_p0, %p198_p2 }
   0x6   : > { %p245_p4 = scmp.lt.s32.totalorder (!%p199_p3), %s771_s15, 1  ;;  %v781_v0 = vmov (!%p199_p3), 5   ;;  %v782_v1 = vmov (!%p199_p3), 4   ;;  %s783_s26 = smov (!%p199_p3), 1   ;;  %v784_v12 = vmov (!%p199_p3), 3   ;;  %v785_v13 = vmov (!%p199_p3), 1  }
   0x7   : > { %202 = sbr.rel (%p199_p3) target bundleno = 524 (0x20c), region = 32  ;;  %740 = vset.pattern.permute.xlu1 (!%p199_p3), %v781_v0  ;;  %739 = vset.pattern.permute.xlu0 (!%p199_p3), %v782_v1  ;;  %v786_v14 = vmov (!%p199_p3), 2   ;;  %vm297_vm0 = vcmask (!%p199_p3), 7168   ;;  %s787_s27 = smov (!%p199_p3), 127   ;;  %v789_v45 = vmov (!%p199_p3), 0   ;;  %vm374_vm1 = vcmask (!%p199_p3), 1039360  }
   0x8   : > { %s788_s28 = smov (!%p199_p3), 126   ;;  %528 = vmatprep.mubr.bf16.mxu0 (!%p199_p3), %v789_v45  ;;  %vm419_vm2 = vcmask (!%p199_p3), 1031168   ;;  %vm492_vm7 = vcmask (!%p199_p3), 130048   ;;  %vm486_vm8 = vcmask (!%p199_p3), 1040384  }
   0xe   : > { %s886_s15 = smov (!%p245_p4, %s771_s15), 1 }
   0xf   : > { %s702_s19 = sshll.u32 %s886_s15, 4  ;;  %s697_s5 = sshll.u32 %s886_s15, 1 }
  0x10   : > { %s258_s22 = scalar_lea.vmem %s877_s1, %s702_s19  ;;  %s252_s25 = scalar_lea.vmem %s876_s0, %s702_s19 }
  0x11   : > { %v277_v2 = vld [vmem:[%s258_s22] sm:$0xff]  ;;  %v280_v3 = vld [vmem:[%s252_s25 + $0x8] sm:$0xff]  ;;  %s275_s8 = scalar_lea.vmem %s880_s4, %s697_s5  ;;  %s704_s9 = sshll.u32 %s886_s15, 3 }
  0x12   : > { %388 = vperm.xlu1 %740, %v277_v2   ;;  %343 = vperm.xlu0 %739, %v277_v2   ;;  %v283_v4 = vunpack.c.l.bf16 %v280_v3  ;;  %v284_v5 = vunpack.c.h.bf16 %v280_v3  ;;  %v279_v6 = vld [vmem:[%s252_s25] sm:$0xff]  ;;  %v278_v7 = vld [vmem:[%s258_s22 + $0x8] sm:$0xff]  ;;  %s267_s12 = scalar_lea.vmem %s879_s3, %s704_s9 }
  0x13   : > { %v281_v8 = vunpack.c.l.bf16 %v279_v6  ;;  %v282_v9 = vunpack.c.h.bf16 %v279_v6 }
  0x14   : > { %v746_v10 = vpack.i.bf16 %v284_v5, %v283_v4 }
  0x15   : > { %v741_v11 = vpack.i.bf16 %v282_v9, %v281_v8 }
  0x16   : > { %392 = vperm.xlu1 %740, %v278_v7   ;;  %347 = vperm.xlu0 %739, %v278_v7  }
  0x1a   : > { %747 = vrot.lane.b32.xlu1 %v746_v10, %s783_s26  ;;  %742 = vrot.lane.b32.xlu0 %v741_v11, %s783_s26 }
  0x1b   : > { %752 = vset.pattern.permute.xlu1 %v784_v12  ;;  %751 = vset.pattern.permute.xlu0 %v784_v12 }
  0x1e   : > { %310 = vrot.lane.b32.xlu1 %v278_v7, %s783_s26  ;;  %308 = vrot.lane.b32.xlu0 %v277_v2, %s783_s26 }
  0x22   : > { %323 = vperm.xlu1 %752, %v278_v7   ;;  %319 = vperm.xlu0 %751, %v277_v2  }
  0x26   : > { %753 = vset.pattern.permute.xlu1 %v785_v13  ;;  %754 = vset.pattern.permute.xlu0 %v785_v13 }
  0x27   : > { %331 = vperm.xlu1 %753, %v277_v2   ;;  %335 = vperm.xlu0 %754, %v278_v7  }
  0x2b   : > { %755 = vset.pattern.permute.xlu1 %v786_v14  ;;  %756 = vset.pattern.permute.xlu0 %v786_v14 }
  0x2c   : > { %437 = vperm.xlu1 %755, %v277_v2  }
  0x30   : > { %441 = vperm.xlu1 %755, %v278_v7  }
  0x91   : > { %v389_v15 = vpop.permute.xlu1 %388  ;;  %v344_v16 = vpop.permute.xlu0 %343 }
  0x95   : > { %v393_v17 = vpop.permute.xlu1 %392  ;;  %v348_v18 = vpop.permute.xlu0 %347 }
  0x99   : > { %v748_v19 = vpop.permute.xlu1 %747  ;;  %v743_v20 = vpop.permute.xlu0 %742 }
  0x9a   : > { %v750_v21 = vunpack.i.h.bf16 %v748_v19  ;;  %v749_v22 = vunpack.i.l.bf16 %v748_v19  ;;  %v745_v23 = vunpack.i.h.bf16 %v743_v20  ;;  %v744_v24 = vunpack.i.l.bf16 %v743_v20 }
  0x9c   : > { %v298_v25 = vsel %vm297_vm0, %v744_v24, %v745_v23  ;;  %v299_v30 = vsel %vm297_vm0, %v749_v22, %v750_v21  ;;  %v314_v34 = vsel %vm297_vm0, %v277_v2, %v744_v24  ;;  %v315_v36 = vsel %vm297_vm0, %v278_v7, %v749_v22 }
  0x9d   : > { %v311_v26 = vpop.permute.xlu1 %310  ;;  %v309_v27 = vpop.permute.xlu0 %308  ;;  %v351_v28 = vmul.f32 %v344_v16, %v298_v25  ;;  %v354_v33 = vmul.f32 %v348_v18, %v299_v30  ;;  %v350_v37 = vmul.f32 %v344_v16, %v314_v34  ;;  %v353_v38 = vmul.f32 %v348_v18, %v315_v36 }
  0x9e   : > { %v316_v29 = vsel %vm297_vm0, %v745_v23, %v309_v27  ;;  %v317_v32 = vsel %vm297_vm0, %v750_v21, %v311_v26  ;;  %v396_v39 = vmul.f32 %v389_v15, %v298_v25  ;;  %v399_v41 = vmul.f32 %v393_v17, %v299_v30 }
  0x9f   : > { %v352_v31 = vmul.f32 %v344_v16, %v316_v29  ;;  %364 = vrot.lane.b32.xlu0 %v351_v28, %s787_s27  ;;  %v355_v35 = vmul.f32 %v348_v18, %v317_v32  ;;  %v397_v40 = vmul.f32 %v389_v15, %v316_v29  ;;  %v400_v42 = vmul.f32 %v393_v17, %v317_v32 }
  0xa0   : > { %v395_v43 = vmul.f32 %v389_v15, %v314_v34  ;;  %v398_v44 = vmul.f32 %v393_v17, %v315_v36 }
  0xa1   : > { %366 = vrot.lane.b32.xlu1 %v352_v31, %s787_s27  ;;  %v324_v46 = vpop.permute.xlu1 %323  ;;  %v320_v48 = vpop.permute.xlu0 %319 }
  0xa2   : > { %v327_v57 = vmul.f32 %v320_v48, %v298_v25  ;;  %v329_v62 = vmul.f32 %v324_v46, %v299_v30  ;;  %v326_v3 = vmul.f32 %v320_v48, %v314_v34  ;;  %v328_v7 = vmul.f32 %v324_v46, %v315_v36  ;;  %v489_v48 = vld [vmem:[%s878_s2] sm:$0xf] }
  0xa3   : > { %370 = vrot.lane.b32.xlu0 %v354_v33, %s787_s27 }
  0xa5   : > { %372 = vrot.lane.b32.xlu1 %v355_v35, %s787_s27 }
  0xa6   : > { %v332_v47 = vpop.permute.xlu1 %331  ;;  %v336_v50 = vpop.permute.xlu0 %335 }
  0xa7   : > { %362 = vrot.lane.b32.xlu0 %v350_v37, %s787_s27  ;;  %v339_v60 = vadd.f32 %v332_v47, %v327_v57  ;;  %v341_v4 = vadd.f32 %v336_v50, %v329_v62  ;;  %v338_v9 = vadd.f32 %v332_v47, %v326_v3  ;;  %v340_v14 = vadd.f32 %v336_v50, %v328_v7 }
  0xa9   : > { %368 = vrot.lane.b32.xlu1 %v353_v38, %s787_s27 }
  0xab   : > { %409 = vrot.lane.b32.xlu0 %v396_v39, %s788_s28  ;;  %v438_v49 = vpop.permute.xlu1 %437 }
  0xad   : > { %411 = vrot.lane.b32.xlu1 %v397_v40, %s788_s28 }
  0xaf   : > { %415 = vrot.lane.b32.xlu0 %v399_v41, %s788_s28  ;;  %v442_v51 = vpop.permute.xlu1 %441 }
  0xb1   : > { %417 = vrot.lane.b32.xlu1 %v400_v42, %s788_s28 }
  0xb3   : > { %407 = vrot.lane.b32.xlu0 %v395_v43, %s788_s28 }
  0xb5   : > { %413 = vrot.lane.b32.xlu1 %v398_v44, %s788_s28 }
 0x111   : > { %v365_v52 = vpop.permute.xlu0 %364 }
 0x113   : > { %v367_v53 = vpop.permute.xlu1 %366 }
 0x114   : > { %v376_v59 = vsel %vm374_vm1, %v365_v52, %v367_v53 }
 0x115   : > { %v371_v54 = vpop.permute.xlu0 %370  ;;  %v384_v63 = vadd.f32 %v376_v59, %v339_v60 }
 0x117   : > { %v373_v55 = vpop.permute.xlu1 %372 }
 0x118   : > { %v378_v1 = vsel %vm374_vm1, %v371_v54, %v373_v55 }
 0x119   : > { %v363_v56 = vpop.permute.xlu0 %362  ;;  %v386_v10 = vadd.f32 %v378_v1, %v341_v4 }
 0x11a   : > { %v375_v8 = vsel %vm374_vm1, %v363_v56, %v365_v52 }
 0x11b   : > { %v369_v58 = vpop.permute.xlu1 %368  ;;  %v383_v16 = vadd.f32 %v375_v8, %v338_v9 }
 0x11c   : > { %v377_v11 = vsel %vm374_vm1, %v369_v58, %v371_v54 }
 0x11d   : > { %v410_v61 = vpop.permute.xlu0 %409  ;;  %v385_v19 = vadd.f32 %v377_v11, %v340_v14 }
 0x11f   : > { %v412_v0 = vpop.permute.xlu1 %411 }
 0x120   : > { %v421_v2 = vsel %vm419_vm2, %v410_v61, %v412_v0 }
 0x121   : > { %v429_v5 = vadd.f32 %v421_v2, %v384_v63  ;;  %v416_v6 = vpop.permute.xlu0 %415 }
 0x123   : > { %v418_v12 = vpop.permute.xlu1 %417  ;;  %v445_v13 = vmul.f32 %v438_v49, %v429_v5  ;;  %vm433_vm3 = vcmp.gt.f32.partialorder %v429_v5, 0.0 }
 0x124   : > { %v423_v15 = vsel %vm419_vm2, %v416_v6, %v418_v12 }
 0x125   : > { %v431_v17 = vadd.f32 %v423_v15, %v386_v10  ;;  %v408_v18 = vpop.permute.xlu0 %407  ;;  %v449_v24 = vsel %vm433_vm3, %v429_v5, %v445_v13 }
 0x126   : > { %v420_v20 = vsel %vm419_vm2, %v408_v18, %v410_v61  ;;  %v467_v30 = vmul.f32 %v449_v24, %v449_v24 }
 0x127   : > { %v428_v21 = vadd.f32 %v420_v20, %v383_v16  ;;  %v414_v22 = vpop.permute.xlu1 %413  ;;  %vm435_vm4 = vcmp.gt.f32.partialorder %v431_v17, 0.0  ;;  %v447_v23 = vmul.f32 %v442_v51, %v431_v17 }
 0x128   : > { %v422_v25 = vsel %vm419_vm2, %v414_v22, %v416_v6 }
 0x129   : > { %v444_v26 = vmul.f32 %v438_v49, %v428_v21  ;;  %v430_v27 = vadd.f32 %v422_v25, %v385_v19  ;;  %v451_v28 = vsel %vm435_vm4, %v431_v17, %v447_v23  ;;  %vm432_vm5 = vcmp.gt.f32.partialorder %v428_v21, 0.0 }
 0x12a   : > { %v459_v29 = vadd.f32 %v451_v28, %v449_v24  ;;  %v469_v31 = vmul.f32 %v451_v28, %v451_v28  ;;  %v491_v32 = vpack.c.bf16 %v451_v28, %v449_v24 }
 0x12b   : > { %v446_v33 = vmul.f32 %v442_v51, %v430_v27  ;;  %vm434_vm6 = vcmp.gt.f32.partialorder %v430_v27, 0.0  ;;  %v448_v34 = vsel %vm432_vm5, %v428_v21, %v444_v26 }
 0x12c   : > { %v460_v35 = vrot.slane %v459_v29, 4  ;;  %v477_v36 = vadd.f32 %v469_v31, %v467_v30  ;;  %496 = vmatprep.subr.bf16.mxu0 %v491_v32  ;;  %v466_v38 = vmul.f32 %v448_v34, %v448_v34 }
 0x12d   : > { %v450_v37 = vsel %vm434_vm6, %v430_v27, %v446_v33 }
 0x12e   : > { %v461_v39 = vadd.f32 %v460_v35, %v459_v29  ;;  %v478_v40 = vrot.slane %v477_v36, 4  ;;  %v452_v41 = vadd.f32 %v450_v37, %v448_v34  ;;  %v468_v42 = vmul.f32 %v450_v37, %v450_v37 }
 0x12f   : > { %v490_v43 = vpack.c.bf16 %v450_v37, %v448_v34 }
 0x130   : > { %v462_v44 = vrot.slane %v461_v39, 2  ;;  %v479_v45 = vadd.f32 %v478_v40, %v477_v36  ;;  %v453_v46 = vrot.slane %v452_v41, 4  ;;  %v470_v47 = vadd.f32 %v468_v42, %v466_v38 }
 0x131   : > { %497 = vmatpush1.bf16.msra.mxu0 %v490_v43 }
 0x132   : > { %v463_v49 = vadd.f32 %v462_v44, %v461_v39  ;;  %v480_v50 = vrot.slane %v479_v45, 2  ;;  %v454_v51 = vadd.f32 %v453_v46, %v452_v41  ;;  %v471_v52 = vrot.slane %v470_v47, 4 }
 0x134   : > { %v481_v53 = vadd.f32 %v480_v50, %v479_v45  ;;  %v455_v54 = vrot.slane %v454_v51, 2  ;;  %v472_v55 = vadd.f32 %v471_v52, %v470_v47  ;;  %698 = vmatmul.mubr.msk.bf16.vlgmr.msra.gmra.mrb[0].mxu0 %vm492_vm7, %v489_v48  ;;  %v464_v56 = vrot.slane %v463_v49, 1 }
 0x136   : > { %v456_v57 = vadd.f32 %v455_v54, %v454_v51  ;;  %v473_v58 = vrot.slane %v472_v55, 2  ;;  %v482_v59 = vrot.slane %v481_v53, 1  ;;  %v465_v62 = vadd.f32 %v464_v56, %v463_v49 }
 0x138   : > { %v457_v60 = vrot.slane %v456_v57, 1  ;;  %v474_v61 = vadd.f32 %v473_v58, %v472_v55  ;;  %v483_v1 = vadd.f32 %v482_v59, %v481_v53 }
 0x13a   : > { %v458_v63 = vadd.f32 %v457_v60, %v456_v57  ;;  %v475_v0 = vrot.slane %v474_v61, 1 }
 0x13c   : > { %v476_v2 = vadd.f32 %v475_v0, %v474_v61  ;;  %v484_v3 = vadd.f32 %v465_v62, %v458_v63 }
 0x13e   : > { %v485_v4 = vadd.f32 %v483_v1, %v476_v2 }
 0x140   : > { %v487_v5 = vsel %vm486_vm8, %v484_v3, %v485_v4 }
 0x141   : > { %488 = vst [vmem:[%s275_s8] sm:$0x3] %v487_v5 }
 0x207   : > { %v530_v6 = vpop.f32.mrb[0].mxu0 }
 0x208   : > { %v532_v7 = vpop.f32.mrb[1].mxu0 }
 0x209   : > { %v705_v8 = vpack.c.bf16 %v532_v7, %v530_v6  ;;  %v534_v9 = vpop.f32.mrb[2].mxu0 }
 0x20a   : > { %v535_v10 = vpop.f32.mrb[3].mxu0 }
 0x20b   : > { %545 = vst [vmem:[%s267_s12] sm:$0xff] %v705_v8 }
 0x20c PF: > { %s15_s17 = sadd.s32 1, %s779_s17   ;;  %s881_s15 = smov %s775_s16 }
 0x20d   : > { %p12_p5 = scmp.ge.s32.totalorder %s15_s17, 4   ;;  %s882_s16 = smov %s884_s18 }
 0x20f   :  { %14 = sbr.rel (!%p12_p5) target bundleno = 2 (0x2), region = 77 }

// kernel: tcn_block.5
= control target key start
LH: loop header
LB: loop body
LE: loop exit
PB: predicated region body
PF: predicated region fallthrough
CT: control target
= control target key end

     0   :  { %8 = vsyncpa [#allocation3], 0  ;;  %s698_s0 = inlined_call_operand.vmem [shape: f32[2,8,256], index: 0, kind: input, shape index: {}]   ;;  %s699_s1 = inlined_call_operand.vmem [shape: bf16[2,8,256], index: 1, kind: input, shape index: {}]   ;;  %s700_s2 = inlined_call_operand.vmem [shape: f32[2,8,2], index: 2, kind: input, shape index: {}]   ;;  %s701_s3 = inlined_call_operand.hbm [shape: f32[2,8,256], index: 3, kind: output, shape index: {}]  }
   0x1   :  { %10 = vsyncpa [#allocation3 + $0x1], 0  ;;  %s580_s12 = smov 0   ;;  %s582_s13 = smov 0  }
   0x2   :  { %s584_s14 = smov 0   ;;  %s586_s15 = smov 0  }
   0x3   :  { %s588_s16 = smov 0   ;;  %s590_s17 = smov 0  }
   0x4 LB: > { %s399_s18 = sadd.s32 4294967295, %s555_s17   ;;  %s400_s19 = sadd.s32 4294967294, %s555_s17   ;;  %s555_s17 = sphi %s590_s17, %s16_s17   ;;  %s551_s16 = sphi %s588_s16, %s708_s16   ;;  %s547_s15 = sphi %s586_s15, %s707_s15   ;;  %s543_s14 = sphi %s584_s14, %s706_s14   ;;  %s539_s13 = sphi %s582_s13, %s705_s13   ;;  %s535_s12 = sphi %s580_s12, %s704_s12  }
   0x5   : > { %s28_s20 = sadd.s32 1, %s551_s16  ;;  %s119_s21 = sadd.s32 1, %s543_s14 }
   0x6   : > { %p30_p0 = scmp.ge.s32.totalorder %s28_s20, 2  ;;  %p129_p1 = scmp.ne.s32.totalorder %s543_s14, %s539_s13 }
   0x7   : > { %p130_p2 = scmp.eq.s32.totalorder %s399_s18, 1  ;;  %p135_p3 = scmp.ne.s32.totalorder %s539_s13, %s535_s12 }
   0x8   : > { %s710_s20 = smov (%p30_p0, %s28_s20), 0  ;;  %p136_p5 = scmp.eq.s32.totalorder %s400_s19, 1 }
   0x9   : > { %p620_p4 = por %p130_p2, %p129_p1  ;;  %s114_s23 = ssub.s32 %s551_s16, %s710_s20 }
   0xa   : > { %p403_p6 = scmp.ge.s32.totalorder %s555_s17, 1  ;;  %p117_p7 = scmp.eq.s32.totalorder %s114_s23, 0 }
   0xb   : > { %p627_p8 = por %p136_p5, %p135_p3  ;;  %p187_p9 = scmp.lt.s32.totalorder %s555_s17, 3 }
   0xc   : > { %s633_s25 = scalar_select %p117_p7, %s543_s14, %s119_s21  }
   0xd   : > { %p188_p10 = pnand %p403_p6, %p187_p9 }
   0xe   : > { %p229_p11 = scmp.lt.s32.totalorder (!%p188_p10), %s547_s15, 1  ;;  %v557_v0 = vmov (!%p188_p10), 0   ;;  %v558_v2 = vmov (!%p188_p10), 1   ;;  %s225_s7 = sand.u32 (!%p188_p10), 1, %s539_s13  }
   0xf   : > { %191 = sbr.rel (%p188_p10) target bundleno = 178 (0xb2), region = 32  ;;  %475 = vset.pattern.permute.xlu0 (!%p188_p10), %v557_v0  ;;  %s404_s8 = sshll.u32 (!%p188_p10), %s225_s7, 4 }
  0x10   : > { %s417_s19 = sshll.u32 (!%p188_p10), %s547_s15, 8  ;;  %s227_s21 = scalar_lea.vmem (!%p188_p10), [#allocation2], %s404_s8 }
  0x11   : > { %s293_s23 = sshll.u32 (!%p188_p10), %s227_s21, 4  ;;  %s651_s28 = scalar_lea.hbm (!%p188_p10), %s701_s3, %s417_s19  ;;  %s653_s23 = int_to_ptr.vmem [resolvable:$true] %s293_s23 }
  0x12   : > { %s277_s29 = scalar_lea.sflag (!%p188_p10), [#allocation3], %s225_s7 }
  0x16   : > { %s230_s26 = scalar_select %p229_p11, %s547_s15, 1 }
  0x17   : > { %s477_s15 = scalar_lea.vmem %s653_s23, 256 }
  0x18   : > { %s416_s27 = sshll.u32 %s230_s26, 3  ;;  %s415_s9 = sshll.u32 %s230_s26, 4 }
  0x19   : > { %s251_s30 = scalar_lea.vmem %s700_s2, %s416_s27  ;;  %s246_s6 = scalar_lea.vmem %s699_s1, %s416_s27 }
  0x1a   : > { %v253_v1 = vld [vmem:[%s251_s30] sm:$0xff]  ;;  %s236_s18 = scalar_lea.vmem %s698_s0, %s415_s9  ;;  %p478_p12 = scmp.ne.s32.totalorder %s653_s23, %s477_s15 }
  0x1b   : > { %259 = vperm.xlu0 %475, %v253_v1   ;;  %v254_v3 = vld [vmem:[%s246_s6] sm:$0xff]  ;;  %v271_v11 = vld [vmem:[%s236_s18 + $0x8] sm:$0xff]  ;;  %s559_s30 = smov [#allocation2]  }
  0x1c   : > { %v255_v5 = vunpack.c.l.bf16 %v254_v3  ;;  %v256_v6 = vunpack.c.h.bf16 %v254_v3  ;;  %v270_v10 = vld [vmem:[%s236_s18] sm:$0xff]  ;;  %p479_p13 = pnand %p478_p12, %p620_p4  ;;  %s481_s4 = sshll.u32 %s559_s30, 4  ;;  %s482_s4 = int_to_ptr.vmem [resolvable:$false] %s481_s4 }
  0x1d   : > { %s483_s5 = scalar_lea.vmem %s482_s4, 512  ;;  %p484_p1 = scmp.lt.s32.totalorder %s653_s23, %s482_s4 }
  0x1e   : > { %p480_p0 = pneg %p479_p13  ;;  %p485_p2 = scmp.lt.s32.totalorder %s483_s5, %s477_s15 }
  0x1f   : > { %476 = vset.pattern.permute.xlu0 %v558_v2 }
  0x20   : > { %265 = vperm.xlu0 %476, %v253_v1   ;;  %p486_p3 = por %p485_p2, %p484_p1 }
  0x22   : > { %p487_p5 = pnand %p486_p3, %p480_p0 }
  0x9a   : > { %v260_v4 = vpop.permute.xlu0 %259 }
  0x9b   : > { %v262_v7 = vmul.f32 %v260_v4, %v255_v5  ;;  %v263_v8 = vmul.f32 %v260_v4, %v256_v6 }
  0x9f   : > { %v266_v9 = vpop.permute.xlu0 %265 }
  0xa0   : > { %v268_v12 = vadd.f32 %v266_v9, %v262_v7  ;;  %v269_v13 = vadd.f32 %v266_v9, %v263_v8 }
  0xa2   : > { %v272_v14 = vadd.f32 %v270_v10, %v268_v12  ;;  %v273_v15 = vadd.f32 %v271_v11, %v269_v13 }
  0xa4   : > { %274 = vst [vmem:[%s227_s21] sm:$0xff] %v272_v14  ;;  %275 = vst [vmem:[%s227_s21 + $0x8] sm:$0xff] %v273_v15 }
  0xa5   : > { %490 = shalt.err (!%p487_p5)
}
  0xa6   : > { %s491_s6 = scalar_lea.hbm %s651_s28, 256  ;;  %s495_s9 = scalar_lea.hbm %s701_s3, 512 }
  0xa7   : > { %p492_p6 = scmp.ne.s32.totalorder %s651_s28, %s491_s6  ;;  %p496_p10 = scmp.lt.u32.totalorder %s651_s28, %s701_s3 }
  0xa8   : > { %p497_p11 = scmp.lt.u32.totalorder %s495_s9, %s491_s6  ;;  %p499_p13 = scmp.lt.u32.totalorder %s491_s6, %s651_s28 }
  0xa9   : > { %p493_p7 = pnand %p492_p6, %p620_p4 }
  0xaa   : > { %p498_p12 = por %p497_p11, %p496_p10 }
  0xab   : > { %p494_p9 = pneg %p493_p7 }
  0xac   : > { %p500_p0 = por %p499_p13, %p498_p12 }
  0xae   : > { %p501_p1 = pnand %p500_p0, %p494_p9 }
  0xb0   : > { %504 = shalt.err (!%p501_p1)
}
  0xb1   : > { %418 = dma.vmem_to_hbm [thread:$0]  (%p620_p4), %s653_s23, 256, %s651_s28, %s277_s29  }
  0xb2 PF: > { %p424_p2 = scmp.ge.s32.totalorder %s555_s17, 2  ;;  %s305_s18 = sand.u32 1, %s535_s12  }
  0xb3   : > { %s306_s19 = scalar_lea.sflag [#allocation3], %s305_s18 }
  0xb4   : > { %p421_p3 = pnand %p424_p2, %p627_p8 }
  0xb6   : > { %530 = dma.done.wait (!%p421_p3), %s306_s19, 256  }
  0xb7   : > { %532 = vsyncadd (!%p421_p3), %s306_s19, 4294967040  ;;  %s16_s17 = sadd.s32 1, %s555_s17   ;;  %s704_s12 = smov %s539_s13 }
  0xb8   : > { %p13_p5 = scmp.ge.s32.totalorder %s16_s17, 4   ;;  %s705_s13 = smov %s543_s14 }
  0xb9   : > { %s706_s14 = smov %s633_s25  ;;  %s707_s15 = smov %s551_s16 }
  0xba   : > { %s708_s16 = smov %s710_s20  ;;  %15 = sbr.rel (!%p13_p5) target bundleno = 4 (0x4), region = 73 }
  0xc1   :  { %311 = vsyncpa [#allocation3], 1 }
  0xc2   :  { %313 = vsyncpa [#allocation3 + $0x1], 1 }

// kernel: tcn_block.3
= control target key start
LH: loop header
LB: loop body
LE: loop exit
PB: predicated region body
PF: predicated region fallthrough
CT: control target
= control target key end

     0   :  { %s667_s20 = smov 0   ;;  %s669_s21 = smov 0   ;;  %s717_s0 = inlined_call_operand.<no memory space> [shape: f32[1], index: 0, kind: input, shape index: {}]   ;;  %s718_s1 = inlined_call_operand.vmem [shape: bf16[2,8,256], index: 1, kind: input, shape index: {}]   ;;  %s719_s2 = inlined_call_operand.vmem [shape: bf16[16,8], index: 2, kind: input, shape index: {}]   ;;  %s720_s3 = inlined_call_operand.vmem [shape: f32[16,1], index: 3, kind: input, shape index: {}]   ;;  %s721_s4 = inlined_call_operand.vmem [shape: bf16[2,16,256], index: 4, kind: output, shape index: {0}]   ;;  %s722_s5 = inlined_call_operand.vmem [shape: f32[2,1,2,128], index: 5, kind: output, shape index: {1}]  }
   0x1   :  { %11 = sst [smem:[#allocation2]] %s717_s0  ;;  %s671_s22 = smov 0  }
   0x2 LB: > { %s29_s0 = sadd.s32 1, %s627_s21  ;;  %p561_p0 = scmp.ge.s32.totalorder %s631_s22, 1  ;;  %s631_s22 = sphi %s671_s22, %s17_s22   ;;  %s627_s21 = sphi %s669_s21, %s724_s21   ;;  %s623_s20 = sphi %s667_s20, %s723_s20  }
   0x3   : > { %p31_p1 = scmp.ge.s32.totalorder %s29_s0, 2  ;;  %p214_p2 = scmp.lt.s32.totalorder %s631_s22, 3 }
   0x5   : > { %s726_s0 = smov (%p31_p1, %s29_s0), 0  ;;  %p215_p3 = pnand %p561_p0, %p214_p2 }
   0x6   : > { %p258_p4 = scmp.lt.s32.totalorder (!%p215_p3), %s623_s20, 1  ;;  %v633_v0 = vmov (!%p215_p3), 0   ;;  %v288_v1 = vld [vmem:[%s720_s3] sm:$0xff] (!%p215_p3)  ;;  %v289_v2 = vld [vmem:[%s720_s3 + $0x8] sm:$0xff] (!%p215_p3)  ;;  %vm314_vm0 = vcmask (!%p215_p3), 1043456   ;;  %vm310_vm1 = vcmask (!%p215_p3), 64512  }
   0x7   : > { %218 = sbr.rel (%p215_p3) target bundleno = 264 (0x108), region = 36  ;;  %353 = vmatprep.mubr.bf16.mxu0 (!%p215_p3), %v633_v0  ;;  %605 = vset.pattern.permute.xlu0 (!%p215_p3), %v633_v0  ;;  %v608_v7 = vld [vmem:[%s719_s2] sm:$0xff] (!%p215_p3)   ;;  %s364_s8 = sld [smem:[#allocation2]] (!%p215_p3)  ;;  %vm412_vm6 = vcmask (!%p215_p3), 1040384  }
   0x8   : > { %292 = vperm.xlu0 (!%p215_p3), %605, %v288_v1  }
   0xc   : > { %297 = vperm.xlu0 (!%p215_p3), %605, %v289_v2  }
   0xd   : > { %v369_v10 = vstv (!%p215_p3), %s364_s8 }
   0xe   : > { %s728_s20 = smov (!%p258_p4, %s623_s20), 1 }
   0xf   : > { %s576_s27 = sshll.u32 %s728_s20, 3  ;;  %s577_s9 = sshll.u32 %s728_s20, 4 }
  0x10   : > { %s265_s30 = scalar_lea.vmem %s718_s1, %s576_s27  ;;  %s275_s12 = scalar_lea.vmem %s721_s4, %s577_s9 }
  0x11   : > { %v285_v3 = vld [vmem:[%s265_s30] sm:$0xff]  ;;  %s566_s13 = sshll.u32 %s728_s20, 1 }
  0x12   : > { %v569_v4 = vcombine.high %v285_v3, %v285_v3  ;;  %v568_v5 = vcombine.low %v285_v3, %v285_v3  ;;  %s283_s16 = scalar_lea.vmem %s722_s5, %s566_s13 }
  0x14   : > { %570 = vmatprep.subr.msk.bf16.mxu0 %vm314_vm0, %v569_v4  ;;  %v316_v6 = vsel %vm314_vm0, %v568_v5, 0 }
  0x15   : > { %322 = vmatpush1.bf16.msra.mxu0 %v316_v6 }
  0x18   : > { %571 = vmatmul.mubr.msk.bf16.vlgmr.msra.gmra.mrb[0].mxu0 %vm310_vm1, %v608_v7 }
  0x87   : > { %v293_v8 = vpop.permute.xlu0 %292 }
  0x8b   : > { %v298_v13 = vpop.permute.xlu0 %297 }
  0xeb   : > { %v355_v9 = vpop.f32.mrb[0].mxu0 }
  0xec   : > { %v356_v11 = vadd.f32 %v355_v9, %v293_v8  ;;  %v357_v12 = vpop.f32.mrb[1].mxu0 }
  0xed   : > { %v358_v14 = vadd.f32 %v357_v12, %v293_v8  ;;  %v359_v15 = vpop.f32.mrb[2].mxu0 }
  0xee   : > { %vm365_vm2 = vcmp.gt.f32.partialorder %v356_v11, 0.0  ;;  %v370_v16 = vmul.f32 %v369_v10, %v356_v11  ;;  %v360_v17 = vadd.f32 %v359_v15, %v298_v13  ;;  %v361_v18 = vpop.f32.mrb[3].mxu0 }
  0xef   : > { %vm366_vm3 = vcmp.gt.f32.partialorder %v358_v14, 0.0  ;;  %v371_v19 = vmul.f32 %v369_v10, %v358_v14  ;;  %v362_v20 = vadd.f32 %v361_v18, %v298_v13 }
  0xf0   : > { %v374_v21 = vsel %vm365_vm2, %v356_v11, %v370_v16  ;;  %vm367_vm4 = vcmp.gt.f32.partialorder %v360_v17, 0.0  ;;  %v372_v22 = vmul.f32 %v369_v10, %v360_v17 }
  0xf1   : > { %v375_v23 = vsel %vm366_vm3, %v358_v14, %v371_v19  ;;  %vm368_vm5 = vcmp.gt.f32.partialorder %v362_v20, 0.0  ;;  %v373_v24 = vmul.f32 %v369_v10, %v362_v20  ;;  %v392_v27 = vmul.f32 %v374_v21, %v374_v21 }
  0xf2   : > { %v578_v25 = vpack.c.bf16 %v375_v23, %v374_v21  ;;  %v376_v26 = vsel %vm367_vm4, %v360_v17, %v372_v22  ;;  %v393_v31 = vmul.f32 %v375_v23, %v375_v23 }
  0xf3   : > { %v378_v28 = vadd.f32 %v376_v26, %v374_v21  ;;  %v394_v29 = vmul.f32 %v376_v26, %v376_v26  ;;  %v377_v30 = vsel %vm368_vm5, %v362_v20, %v373_v24 }
  0xf4   : > { %427 = vst [vmem:[%s275_s12] sm:$0xff] %v578_v25  ;;  %v385_v32 = vadd.f32 %v377_v30, %v375_v23  ;;  %v395_v33 = vmul.f32 %v377_v30, %v377_v30  ;;  %v579_v34 = vpack.c.bf16 %v377_v30, %v376_v26 }
  0xf5   : > { %v379_v35 = vrot.slane %v378_v28, 4  ;;  %v396_v36 = vadd.f32 %v394_v29, %v392_v27 }
  0xf6   : > { %v386_v37 = vrot.slane %v385_v32, 4  ;;  %v403_v38 = vadd.f32 %v395_v33, %v393_v31  ;;  %428 = vst [vmem:[%s275_s12 + $0x8] sm:$0xff] %v579_v34 }
  0xf7   : > { %v380_v39 = vadd.f32 %v379_v35, %v378_v28  ;;  %v397_v40 = vrot.slane %v396_v36, 4 }
  0xf8   : > { %v387_v41 = vadd.f32 %v386_v37, %v385_v32  ;;  %v404_v42 = vrot.slane %v403_v38, 4 }
  0xf9   : > { %v381_v43 = vrot.slane %v380_v39, 2  ;;  %v398_v44 = vadd.f32 %v397_v40, %v396_v36 }
  0xfa   : > { %v388_v45 = vrot.slane %v387_v41, 2  ;;  %v405_v46 = vadd.f32 %v404_v42, %v403_v38 }
  0xfb   : > { %v382_v47 = vadd.f32 %v381_v43, %v380_v39  ;;  %v399_v48 = vrot.slane %v398_v44, 2 }
  0xfc   : > { %v389_v49 = vadd.f32 %v388_v45, %v387_v41  ;;  %v406_v50 = vrot.slane %v405_v46, 2 }
  0xfd   : > { %v383_v51 = vrot.slane %v382_v47, 1  ;;  %v400_v52 = vadd.f32 %v399_v48, %v398_v44 }
  0xfe   : > { %v390_v53 = vrot.slane %v389_v49, 1  ;;  %v407_v54 = vadd.f32 %v406_v50, %v405_v46 }
  0xff   : > { %v384_v55 = vadd.f32 %v383_v51, %v382_v47  ;;  %v401_v56 = vrot.slane %v400_v52, 1 }
 0x100   : > { %v391_v57 = vadd.f32 %v390_v53, %v389_v49  ;;  %v408_v58 = vrot.slane %v407_v54, 1 }
 0x101   : > { %v402_v59 = vadd.f32 %v401_v56, %v400_v52 }
 0x102   : > { %v409_v60 = vadd.f32 %v408_v58, %v407_v54  ;;  %v410_v61 = vadd.f32 %v391_v57, %v384_v55 }
 0x104   : > { %v411_v62 = vadd.f32 %v409_v60, %v402_v59 }
 0x106   : > { %v413_v63 = vsel %vm412_vm6, %v410_v61, %v411_v62 }
 0x107   : > { %414 = vst [vmem:[%s283_s16] sm:$0x3] %v413_v63 }
 0x108 PF: > { %s17_s22 = sadd.s32 1, %s631_s22   ;;  %s723_s20 = smov %s627_s21 }
 0x109   : > { %p14_p5 = scmp.ge.s32.totalorder %s17_s22, 4   ;;  %s724_s21 = smov %s726_s0 }
 0x10b   :  { %16 = sbr.rel (!%p14_p5) target bundleno = 2 (0x2), region = 78 }

</bundles_post_ra>
